<compile_context>
chip_gen: v7x
topology: tpu7x:2x2x1
jax: 0.10.0
libtpu: 0.0.40
codegen_flags: <defaults>
</compile_context>

<pallas_src>
import jax
import jax.numpy as jnp
from jax.experimental import pallas as pl
from jax.experimental.pallas import tpu as pltpu

IN_FEATURES = 400
HIDDEN = 100
HIDDEN_PAD = 128          # lane-dense hidden width (padded cols stay exactly 0)
NUM_CLASSES = 10
TILE_B = 2048             # ~3.2 MiB f32 x-tile (x2 double-buffer) -- well under scoped VMEM


def mlp_kernel(x_ref, w1_ref, b1_ref, w2_ref, b2_ref, o_ref):
    # x: (tile_b, 400) f32, w1: (400, 128) bf16, b1: (1, 128) f32,
    # w2: (128, 10) bf16, b2: (1, 10) f32, o: (tile_b, 10) f32
    # In-kernel downcast: free VPU work on an HBM-bound kernel, no extra HBM pass.
    x = x_ref[...].astype(jnp.bfloat16)
    # First matmul: bf16 operands, f32 accumulation on the MXU.
    h = jnp.dot(x, w1_ref[...], preferred_element_type=jnp.float32)
    # Bias + ReLU in f32 (native VPU path on v5e; neutral on v6e/v7x).
    h = jnp.maximum(h + b1_ref[...], 0.0)
    # Downcast only for the second MXU matmul; accumulate in f32 again.
    out = jnp.dot(h.astype(jnp.bfloat16), w2_ref[...],
                  preferred_element_type=jnp.float32) + b2_ref[...]
    o_ref[...] = out.astype(o_ref.dtype)


def prepare_params(params_f32):
    """Pad hidden 100->128 and cast weights to bf16 (biases stay f32)."""
    w1, b1, w2, b2 = params_f32            # (400,100), (1,100), (100,10), (1,10)
    w1p = jnp.zeros((IN_FEATURES, HIDDEN_PAD), jnp.float32).at[:, :HIDDEN].set(w1)
    b1p = jnp.zeros((1, HIDDEN_PAD), jnp.float32).at[:, :HIDDEN].set(b1)
    w2p = jnp.zeros((HIDDEN_PAD, NUM_CLASSES), jnp.float32).at[:HIDDEN, :].set(w2)
    return (w1p.astype(jnp.bfloat16), b1p,
            w2p.astype(jnp.bfloat16), b2)


def _round_up(x, m):
    return ((x + m - 1) // m) * m


def _pick_tile_b(B):
    # Tiny batches: block = full batch dim (allowed: block dim == array dim).
    if B <= 8:
        return B
    # Otherwise: 8-row aligned, capped at TILE_B, and sized so the grid has at
    # least 2 steps -> v7x can shard the "parallel" batch axis over its 2 TCs.
    tile_b = min(TILE_B, _round_up(pl.cdiv(B, 2), 8))
    return max(tile_b, 8)


def nn_forward(x_nchw, prepared_params):
    w1, b1, w2, b2 = prepared_params
    B = x_nchw.shape[0]
    # torch's x.flatten(start_dim=1) -> (B, 400); keep native f32, no wrapper cast.
    x = x_nchw.reshape(B, -1)
    assert x.shape[1] == IN_FEATURES, f"expected {IN_FEATURES} features, got {x.shape[1]}"

    tile_b = _pick_tile_b(B)
    grid = (pl.cdiv(B, tile_b),)   # no jnp.pad: Pallas masks the ragged edge block

    # Advisory cost hint so XLA overlaps the custom call with neighbors.
    weight_bytes = (IN_FEATURES * HIDDEN_PAD * 2 + HIDDEN_PAD * 4
                    + HIDDEN_PAD * NUM_CLASSES * 2 + NUM_CLASSES * 4)
    cost = pl.CostEstimate(
        flops=2 * B * (IN_FEATURES * HIDDEN_PAD + HIDDEN_PAD * NUM_CLASSES),
        transcendentals=0,
        bytes_accessed=B * (IN_FEATURES * 4 + NUM_CLASSES * 4) + weight_bytes,
    )

    out = pl.pallas_call(
        mlp_kernel,
        out_shape=jax.ShapeDtypeStruct((B, NUM_CLASSES), jnp.float32),
        grid=grid,
        in_specs=[
            # Streaming input: new tile each grid step -> auto double-buffered DMA.
            pl.BlockSpec((tile_b, IN_FEATURES), lambda i: (i, 0)),
            # Weights/biases: same block every step -> stay resident in VMEM.
            pl.BlockSpec((IN_FEATURES, HIDDEN_PAD), lambda i: (0, 0)),
            pl.BlockSpec((1, HIDDEN_PAD), lambda i: (0, 0)),
            pl.BlockSpec((HIDDEN_PAD, NUM_CLASSES), lambda i: (0, 0)),
            pl.BlockSpec((1, NUM_CLASSES), lambda i: (0, 0)),
        ],
        out_specs=pl.BlockSpec((tile_b, NUM_CLASSES), lambda i: (i, 0)),
        compiler_params=pltpu.CompilerParams(
            # Batch steps are independent: lets v7x shard across its 2 TCs.
            dimension_semantics=("parallel",),
        ),
        cost_estimate=cost,
    )(x, w1, b1, w2, b2)

    return out


def init_params(key):
    # Deterministic init mimicking nn.Linear default (uniform +/- 1/sqrt(fan_in)).
    k1, k2, k3, k4 = jax.random.split(key, 4)
    bound1 = 1.0 / (IN_FEATURES ** 0.5)
    bound2 = 1.0 / (HIDDEN ** 0.5)
    # Stored transposed relative to torch (in, out) so the kernel does x @ W.
    w1 = jax.random.uniform(k1, (IN_FEATURES, HIDDEN), jnp.float32, -bound1, bound1)
    b1 = jax.random.uniform(k2, (1, HIDDEN), jnp.float32, -bound1, bound1)
    w2 = jax.random.uniform(k3, (HIDDEN, NUM_CLASSES), jnp.float32, -bound2, bound2)
    b2 = jax.random.uniform(k4, (1, NUM_CLASSES), jnp.float32, -bound2, bound2)
    return w1, b1, w2, b2


if __name__ == "__main__":
    key = jax.random.PRNGKey(0)
    pkey, xkey = jax.random.split(key)
    params_f32 = init_params(pkey)
    params = prepare_params(params_f32)

    # Small input consistent with 400 flattened features: (B=2, C=1, H=20, W=20).
    x = jax.random.normal(xkey, (2, 1, 20, 20), jnp.float32)

    out = nn_forward(x, params)
    out = jax.block_until_ready(out)
    assert out.shape == (2, 10)

    # Reference using the same bf16/f32-accumulate arithmetic as the kernel.
    w1p, b1p, w2p, b2p = params
    xf = x.reshape(x.shape[0], -1).astype(jnp.bfloat16)
    h_ref = jnp.dot(xf, w1p, preferred_element_type=jnp.float32) + b1p
    h_ref = jnp.maximum(h_ref, 0.0).astype(jnp.bfloat16)
    ref = jnp.dot(h_ref, w2p, preferred_element_type=jnp.float32) + b2p
    assert jnp.allclose(out, ref, atol=1e-2, rtol=1e-2), "mismatch vs bf16 reference"

    # Sanity check against the original full-f32 math (loose tol for bf16 cast).
    w1, b1, w2, b2 = params_f32
    ref_f32 = jnp.maximum(x.reshape(x.shape[0], -1) @ w1 + b1, 0.0) @ w2 + b2
    assert jnp.max(jnp.abs(out - ref_f32)) < 5e-2, "drifted too far from f32 reference"

    # Also exercise a larger, ragged batch (>=2 grid steps, masked edge block).
    xb = jax.random.normal(xkey, (1000, 1, 20, 20), jnp.float32)
    outb = jax.block_until_ready(nn_forward(xb, params))
    refb = jnp.maximum(xb.reshape(1000, -1) @ w1 + b1, 0.0) @ w2 + b2
    assert outb.shape == (1000, 10)
    assert jnp.max(jnp.abs(outb - refb)) < 5e-2, "ragged-batch mismatch"

    print("KERNEL_OK")
</pallas_src>

<mosaic_0001>
module attributes {stable_mosaic.version = 11 : i64} {
  func.func @mlp_kernel(%arg0: i32, %arg1: memref<2x400xf32, #tpu.memory_space<vmem>>, %arg2: memref<400x128xbf16, #tpu.memory_space<vmem>>, %arg3: memref<1x128xf32, #tpu.memory_space<vmem>>, %arg4: memref<128x10xbf16, #tpu.memory_space<vmem>>, %arg5: memref<1x10xf32, #tpu.memory_space<vmem>>, %arg6: memref<2x10xf32, #tpu.memory_space<vmem>>) attributes {dimension_semantics = [#tpu.dimension_semantics<parallel>], iteration_bounds = array<i64: 1>, scalar_prefetch = 0 : i64, scratch_operands = 0 : i64, tpu.core_type = #tpu.core_type<tc>, window_params = [{transform_indices = @transform_0, window_bounds = array<i64: 2, 400>}, {pipeline_mode = #tpu.pipeline_mode<synchronous>, transform_indices = @transform_1, window_bounds = array<i64: 400, 128>}, {pipeline_mode = #tpu.pipeline_mode<synchronous>, transform_indices = @transform_2, window_bounds = array<i64: 1, 128>}, {pipeline_mode = #tpu.pipeline_mode<synchronous>, transform_indices = @transform_3, window_bounds = array<i64: 128, 10>}, {pipeline_mode = #tpu.pipeline_mode<synchronous>, transform_indices = @transform_4, window_bounds = array<i64: 1, 10>}, {transform_indices = @transform_5, window_bounds = array<i64: 2, 10>}]} {
    %c0 = arith.constant 0 : index
    %c0_0 = arith.constant 0 : index
    %0 = vector.load %arg1[%c0, %c0_0] : memref<2x400xf32, #tpu.memory_space<vmem>>, vector<2x400xf32>
    %1 = arith.truncf %0 : vector<2x400xf32> to vector<2x400xbf16>
    %c0_1 = arith.constant 0 : index
    %c0_2 = arith.constant 0 : index
    %2 = vector.load %arg2[%c0_1, %c0_2] : memref<400x128xbf16, #tpu.memory_space<vmem>>, vector<400x128xbf16>
    %cst = arith.constant dense<0.000000e+00> : vector<2x128xf32>
    %3 = tpu.matmul %1, %2, %cst {dimension_numbers = #tpu.dot_dimension_numbers<[1], [0], [0], [1], [0, 0, 1, 1], [], []>} : vector<2x400xbf16>, vector<400x128xbf16>, vector<2x128xf32> -> vector<2x128xf32>
    %c0_3 = arith.constant 0 : index
    %c0_4 = arith.constant 0 : index
    %4 = vector.load %arg3[%c0_3, %c0_4] : memref<1x128xf32, #tpu.memory_space<vmem>>, vector<1x128xf32>
    %5 = vector.broadcast %4 : vector<1x128xf32> to vector<2x128xf32>
    %6 = arith.addf %3, %5 : vector<2x128xf32>
    %cst_5 = arith.constant 0.000000e+00 : f32
    %7 = vector.broadcast %cst_5 : f32 to vector<2x128xf32>
    %8 = arith.maximumf %6, %7 : vector<2x128xf32>
    %9 = arith.truncf %8 : vector<2x128xf32> to vector<2x128xbf16>
    %c0_6 = arith.constant 0 : index
    %c0_7 = arith.constant 0 : index
    %10 = vector.load %arg4[%c0_6, %c0_7] : memref<128x10xbf16, #tpu.memory_space<vmem>>, vector<128x10xbf16>
    %cst_8 = arith.constant dense<0.000000e+00> : vector<2x10xf32>
    %11 = tpu.matmul %9, %10, %cst_8 {dimension_numbers = #tpu.dot_dimension_numbers<[1], [0], [0], [1], [0, 0, 1, 1], [], []>} : vector<2x128xbf16>, vector<128x10xbf16>, vector<2x10xf32> -> vector<2x10xf32>
    %c0_9 = arith.constant 0 : index
    %c0_10 = arith.constant 0 : index
    %12 = vector.load %arg5[%c0_9, %c0_10] : memref<1x10xf32, #tpu.memory_space<vmem>>, vector<1x10xf32>
    %13 = vector.broadcast %12 : vector<1x10xf32> to vector<2x10xf32>
    %14 = arith.addf %11, %13 : vector<2x10xf32>
    %c0_11 = arith.constant 0 : index
    %c0_12 = arith.constant 0 : index
    %15 = vector.load %arg6[%c0_11, %c0_12] : memref<2x10xf32, #tpu.memory_space<vmem>>, vector<2x10xf32>
    tpu.vector_store %arg6[%c0_11, %c0_12], %14 {strides = array<i32>} : memref<2x10xf32, #tpu.memory_space<vmem>>, vector<2x10xf32>,
    return
  }
  func.func @transform_0(%arg0: i32) -> (i32, i32) {
    %c0_i32 = arith.constant 0 : i32
    %c0_i32_0 = arith.constant 0 : i32
    return %arg0, %c0_i32 : i32, i32
  }
  func.func @transform_1(%arg0: i32) -> (i32, i32) {
    %c0_i32 = arith.constant 0 : i32
    %c0_i32_0 = arith.constant 0 : i32
    %c0_i32_1 = arith.constant 0 : i32
    return %c0_i32, %c0_i32_0 : i32, i32
  }
  func.func @transform_2(%arg0: i32) -> (i32, i32) {
    %c0_i32 = arith.constant 0 : i32
    %c0_i32_0 = arith.constant 0 : i32
    %c0_i32_1 = arith.constant 0 : i32
    return %c0_i32, %c0_i32_0 : i32, i32
  }
  func.func @transform_3(%arg0: i32) -> (i32, i32) {
    %c0_i32 = arith.constant 0 : i32
    %c0_i32_0 = arith.constant 0 : i32
    %c0_i32_1 = arith.constant 0 : i32
    return %c0_i32, %c0_i32_0 : i32, i32
  }
  func.func @transform_4(%arg0: i32) -> (i32, i32) {
    %c0_i32 = arith.constant 0 : i32
    %c0_i32_0 = arith.constant 0 : i32
    %c0_i32_1 = arith.constant 0 : i32
    return %c0_i32, %c0_i32_0 : i32, i32
  }
  func.func @transform_5(%arg0: i32) -> (i32, i32) {
    %c0_i32 = arith.constant 0 : i32
    %c0_i32_0 = arith.constant 0 : i32
    return %arg0, %c0_i32 : i32, i32
  }
}

</mosaic_0001>

<bundles_post_ra>
// kernel: tpu_custom_call.1
= control target key start
LH: loop header
LB: loop body
LE: loop exit
PB: predicated region body
PF: predicated region fallthrough
CT: control target
= control target key end

     0   :  { %10 = vsyncpa [#allocation3], 0  ;;  %s765_s0 = inlined_call_operand.vmem [shape: f32[2,400], index: 0, kind: input, shape index: {}]   ;;  %s766_s1 = inlined_call_operand.hbm [shape: bf16[400,128], index: 1, kind: input, shape index: {}]   ;;  %s767_s2 = inlined_call_operand.vmem [shape: f32[1,128], index: 2, kind: input, shape index: {}]   ;;  %s768_s3 = inlined_call_operand.vmem [shape: bf16[128,10], index: 3, kind: input, shape index: {}]   ;;  %s769_s4 = inlined_call_operand.vmem [shape: f32[1,10], index: 4, kind: input, shape index: {}]   ;;  %s770_s5 = inlined_call_operand.hbm [shape: f32[2,10], index: 5, kind: output, shape index: {}]  }
   0x1   :  { %11 = vsyncpa [#allocation4], 0  ;;  %s661_s18 = smov [#allocation2]   ;;  %s613_s22 = scalar_lea.hbm %s766_s1, 3200 }
   0x2   :  { %s19_s19 = sshll.u32 %s661_s18, 4  ;;  %p614_p0 = scmp.ne.s32.totalorder %s766_s1, %s613_s22  ;;  %s20_s19 = int_to_ptr.vmem [resolvable:$true] %s19_s19 }
   0x3   :  { %p617_p1 = scmp.lt.u32.totalorder %s613_s22, %s766_s1 }
   0x5   :  { %p619_p2 = pnand %p617_p1, %p614_p0 }
   0x7   :  { %622 = shalt.err (!%p619_p2)
}
   0x8   :  { %s623_s27 = scalar_lea.vmem %s20_s19, 3200  ;;  %p628_p4 = scmp.lt.s32.totalorder %s20_s19, %s20_s19 }
   0x9   :  { %p624_p3 = scmp.ne.s32.totalorder %s20_s19, %s623_s27  ;;  %p629_p5 = scmp.lt.s32.totalorder %s623_s27, %s623_s27 }
   0xb   :  { %p630_p6 = por %p629_p5, %p628_p4 }
   0xd   :  { %p631_p7 = pnand %p630_p6, %p624_p3 }
   0xf   :  { %634 = shalt.err (!%p631_p7)
}
  0x10   :  { %s662_s28 = smov 64   ;;  %s663_s29 = smov 4  }
  0x11   :  { %25 = dma.hbm_to_vmem [thread:$0]  %s766_s1, 3200, %s20_s19, [#allocation3], %s662_s28, %s662_s28, %s663_s29  }
  0x12   :  { %657 = dma.done.wait [#allocation3], 3200  }
  0x13   :  { %658 = vsyncadd [#allocation3], 4294964096  ;;  %v664_v0 = vmov 0   ;;  %v579_v1 = vld [vmem:[#allocation2 + $0x40] sm:$0xff]   ;;  %v582_v4 = vld [vmem:[#allocation2 + $0x48] sm:$0xff]   ;;  %v42_v16 = vlaneseq  ;;  %vm270_vm0 = vcmask 130048  }
  0x14   :  { %314 = vmatprep.subr.bf16.mxu1 %v664_v0  ;;  %v580_v2 = vld [vmem:[#allocation2 + $0x80] sm:$0xff]   ;;  %520 = vmatprep.subr.bf16.mxu0 %v579_v1  ;;  %v583_v5 = vld [vmem:[#allocation2 + $0x88] sm:$0xff]   ;;  %v585_v7 = vld [vmem:[#allocation2 + $0x50] sm:$0xff]   ;;  %v665_v14 = vmov 1983009808   ;;  %v666_v42 = vmov 0.0  }
  0x15   :  { %v581_v3 = vld [vmem:[#allocation2] sm:$0xff]   ;;  %315 = vmatpush1.bf16.msra.mxu1 %v580_v2  ;;  %v584_v6 = vld [vmem:[#allocation2 + $0x8] sm:$0xff]   ;;  %v586_v8 = vld [vmem:[#allocation2 + $0x90] sm:$0xff]   ;;  %v40_v15 = vunpack.c.l.s4 %v665_v14  ;;  %v43_v21 = vshrl.u32 %v42_v16, 7  ;;  %vm667_vm1 = vmmov 0   ;;  %s668_s26 = smov [#allocation5]  }
  0x16   :  { %521 = vmatpush3.bf16.msra.mxu0 %v581_v3  ;;  %316 = vmatprep.subr.bf16.mxu1 %v664_v0  ;;  %v587_v9 = vld [vmem:[#allocation2 + $0x10] sm:$0xff]   ;;  %v588_v10 = vld [vmem:[#allocation2 + $0x58] sm:$0xff]   ;;  %v591_v13 = vld [vmem:[#allocation2 + $0x60] sm:$0xff]   ;;  %s475_s27 = sshll.u32 %s668_s26, 4  ;;  %vm467_vm2 = vcmask 74752   ;;  %s476_s27 = int_to_ptr.vmem [resolvable:$true] %s475_s27 }
  0x17   :  { %522 = vmatprep.subr.bf16.mxu0 %v582_v4  ;;  %v589_v11 = vld [vmem:[#allocation2 + $0x98] sm:$0xff]   ;;  %v592_v17 = vld [vmem:[#allocation2 + $0xa0] sm:$0xff]   ;;  %v594_v19 = vld [vmem:[#allocation2 + $0x68] sm:$0xff]   ;;  %v41_v20 = vunpack.c.0.s8 %v40_v15  ;;  %p640_p9 = scmp.lt.s32.totalorder %s476_s27, %s476_s27 }
  0x18   :  { %v590_v12 = vld [vmem:[#allocation2 + $0x18] sm:$0xff]   ;;  %v593_v18 = vld [vmem:[#allocation2 + $0x20] sm:$0xff]   ;;  %v595_v22 = vld [vmem:[#allocation2 + $0xa8] sm:$0xff]  }
  0x19   :  { %317 = vmatpush1.bf16.msra.mxu1 %v583_v5  ;;  %v596_v23 = vld [vmem:[#allocation2 + $0x28] sm:$0xff]   ;;  %v597_v24 = vld [vmem:[#allocation2 + $0x70] sm:$0xff]   ;;  %v44_v25 = vsub.s32 %v41_v20, %v43_v21  ;;  %v36_v28 = vld [vmem:[%s765_s0] sm:$0xff] }
  0x1a   :  { %523 = vmatpush3.bf16.msra.mxu0 %v584_v6  ;;  %318 = vmatprep.subr.bf16.mxu1 %v664_v0  ;;  %v598_v26 = vld [vmem:[#allocation2 + $0xb0] sm:$0xff]   ;;  %v600_v29 = vld [vmem:[#allocation2 + $0x78] sm:$0xff]   ;;  %v38_v30 = vcombine.high %v36_v28, %v36_v28  ;;  %v604_v38 = vld [vmem:[#allocation2 + $0xc0] sm:$0xff]  }
  0x1b   :  { %524 = vmatprep.subr.bf16.mxu0 %v585_v7  ;;  %v599_v27 = vld [vmem:[#allocation2 + $0x30] sm:$0xff]   ;;  %v45_v31 = vrot.slane %v36_v28, %v44_v25  ;;  %v601_v32 = vld [vmem:[#allocation2 + $0xb8] sm:$0xff]   ;;  %v605_v41 = vld [vmem:[%s768_s3] sm:$0xff]  }
  0x1c   :  { %v52_v34 = vrot.slane %v38_v30, %v44_v25  ;;  %v602_v35 = vld [vmem:[#allocation2 + $0x38] sm:$0xff]   ;;  %v606_v44 = vld [vmem:[%s768_s3 + $0x8] sm:$0xff]   ;;  %v607_v45 = vld [vmem:[%s768_s3 + $0x10] sm:$0xff]  }
  0x1d   :  { %319 = vmatpush1.bf16.msra.mxu1 %v586_v8  ;;  %v53_v33 = vcombine.high %v45_v31, %v45_v31  ;;  %v59_v39 = vpack.c.bf16 %v45_v31, %v45_v31  ;;  %v608_v46 = vld [vmem:[%s768_s3 + $0x18] sm:$0xff]   ;;  %v609_v47 = vld [vmem:[%s768_s3 + $0x20] sm:$0xff]   ;;  %v610_v48 = vld [vmem:[%s768_s3 + $0x28] sm:$0xff]  }
  0x1e   :  { %525 = vmatpush3.bf16.msra.mxu0 %v587_v9  ;;  %320 = vmatprep.subr.bf16.mxu1 %v664_v0  ;;  %v54_v37 = vcombine.high %v52_v34, %v52_v34  ;;  %v61_v43 = vpack.c.bf16 %v52_v34, %v52_v34  ;;  %v611_v49 = vld [vmem:[%s768_s3 + $0x30] sm:$0xff]   ;;  %v612_v50 = vld [vmem:[%s768_s3 + $0x38] sm:$0xff]   ;;  %v484_v53 = vld [vmem:[%s767_s2] ss:$0 sm:$0xff]  ;;  %s635_s2 = scalar_lea.vmem %s476_s27, 32 }
  0x1f   :  { %526 = vmatprep.subr.bf16.mxu0 %v588_v10  ;;  %v60_v36 = vpack.c.bf16 %v53_v33, %v53_v33  ;;  %v511_v1 = vld [vmem:[%s769_s4] ss:$0 sm:$0xff]  ;;  %p636_p8 = scmp.ne.s32.totalorder %s476_s27, %s635_s2  ;;  %p641_p10 = scmp.lt.s32.totalorder %s635_s2, %s635_s2 }
  0x20   :  { %v62_v40 = vpack.c.bf16 %v54_v37, %v54_v37 }
  0x21   :  { %321 = vmatpush1.bf16.msra.mxu1 %v589_v11  ;;  %306 = vmatprep.mubr.bf16.mxu0 %v60_v36  ;;  %p642_p11 = por %p641_p10, %p640_p9 }
  0x22   :  { %527 = vmatpush3.bf16.msra.mxu0 %v590_v12  ;;  %322 = vmatprep.subr.bf16.mxu1 %v664_v0 }
  0x23   :  { %528 = vmatprep.subr.bf16.mxu0 %v591_v13  ;;  %510 = vmatprep.mubr.msk.bf16.mxu1 %vm270_vm0, %v62_v40  ;;  %p643_p12 = pnand %p642_p11, %p636_p8 }
  0x25   :  { %323 = vmatpush1.bf16.msra.mxu1 %v592_v17 }
  0x26   :  { %529 = vmatpush3.bf16.msra.mxu0 %v593_v18  ;;  %324 = vmatprep.subr.bf16.mxu1 %v664_v0 }
  0x27   :  { %530 = vmatprep.subr.bf16.mxu0 %v594_v19 }
  0x29   :  { %325 = vmatpush1.bf16.msra.mxu1 %v595_v22 }
  0x2a   :  { %531 = vmatpush3.bf16.msra.mxu0 %v596_v23  ;;  %326 = vmatprep.subr.bf16.mxu1 %v664_v0 }
  0x2b   :  { %532 = vmatprep.subr.bf16.mxu0 %v597_v24 }
  0x2d   :  { %327 = vmatpush1.bf16.msra.mxu1 %v598_v26 }
  0x2e   :  { %533 = vmatpush3.bf16.msra.mxu0 %v599_v27  ;;  %328 = vmatprep.subr.bf16.mxu1 %v664_v0 }
  0x2f   :  { %534 = vmatprep.subr.bf16.mxu0 %v600_v29 }
  0x31   :  { %329 = vmatpush1.bf16.msra.mxu1 %v601_v32 }
  0x32   :  { %535 = vmatpush3.bf16.msra.mxu0 %v602_v35  ;;  %330 = vmatprep.subr.bf16.mxu1 %v664_v0 }
  0x33   :  { %551 = vmatprep.subr.bf16.mxu0 %v666_v42 }
  0x35   :  { %307 = vmatmul.mubr.bf16.vlgmr.msra.gmra.mrb[0].mxu0 %v59_v39  ;;  %331 = vmatpush1.bf16.msra.mxu1 %v604_v38 }
  0x36   :  { %552 = vmatpush3.bf16.msra.mxu0 %v605_v41  ;;  %567 = vmatprep.mubr.msk.bf16.mxu0 %vm667_vm1, %v666_v42 }
  0x37   :  { %553 = vmatprep.subr.bf16.mxu0 %v666_v42 }
  0x38   :  { %347 = vmatmul.mubr.bf16.vlgmr.msra.gmra.mrb[0].mxu1 %v61_v43 }
  0x3a   :  { %554 = vmatpush3.bf16.msra.mxu0 %v606_v44 }
  0x3b   :  { %555 = vmatprep.subr.bf16.mxu0 %v666_v42 }
  0x3e   :  { %556 = vmatpush3.bf16.msra.mxu0 %v607_v45 }
  0x3f   :  { %557 = vmatprep.subr.bf16.mxu0 %v666_v42 }
  0x42   :  { %558 = vmatpush3.bf16.msra.mxu0 %v608_v46 }
  0x43   :  { %559 = vmatprep.subr.bf16.mxu0 %v666_v42 }
  0x46   :  { %560 = vmatpush3.bf16.msra.mxu0 %v609_v47 }
  0x47   :  { %561 = vmatprep.subr.bf16.mxu0 %v666_v42 }
  0x4a   :  { %562 = vmatpush3.bf16.msra.mxu0 %v610_v48 }
  0x4b   :  { %563 = vmatprep.subr.bf16.mxu0 %v666_v42 }
  0x4e   :  { %564 = vmatpush3.bf16.msra.mxu0 %v611_v49 }
  0x4f   :  { %565 = vmatprep.subr.bf16.mxu0 %v666_v42 }
  0x52   :  { %566 = vmatpush3.bf16.msra.mxu0 %v612_v50 }
 0x108   :  { %v536_v51 = vpop.f32.mrb[0].mxu0 }
 0x109   :  { %v537_v52 = vpop.f32.mrb[1].mxu0 }
 0x10a   :  { %v538_v54 = vadd.f32 %v537_v52, %v536_v51  ;;  %v539_v55 = vpop.f32.mrb[2].mxu0 }
 0x10b   :  { %v540_v56 = vpop.f32.mrb[3].mxu0  ;;  %v348_v57 = vpop.f32.mrb[0].mxu1 }
 0x10c   :  { %v309_v58 = vadd.f32 %v538_v54, %v484_v53  ;;  %v350_v59 = vpop.f32.mrb[1].mxu1 }
 0x10d   :  { %v351_v60 = vpop.f32.mrb[2].mxu1 }
 0x10e   :  { %v349_v61 = vadd.f32 %v348_v57, %v309_v58  ;;  %v352_v62 = vpop.f32.mrb[3].mxu1 }
 0x110   :  { %v354_v63 = vmax.f32 %v349_v61, 0.0 }
 0x112   :  { %v355_v0 = vpack.c.bf16 %v354_v63, %v354_v63 }
 0x114   :  { %568 = vmatmul.mubr.bf16.vlgmr.msra.gmra.mrb[4].mxu0 %v355_v0 }
 0x1e7   :  { %v461_v2 = vpop.f32.mrb[4].mxu0 }
 0x1e8   :  { %v462_v3 = vadd.f32 %v511_v1, %v461_v2  ;;  %v569_v4 = vpop.f32.mrb[5].mxu0 }
 0x1e9   :  { %v464_v5 = vpop.f32.mrb[6].mxu0 }
 0x1ea   :  { %v570_v6 = vpop.f32.mrb[7].mxu0  ;;  %468 = vst.msk [vmem:[#allocation5] sm:$0x3] %vm467_vm2, %v462_v3 }
 0x1eb   :  { %646 = shalt.err (!%p643_p12)
}
 0x1ec   :  { %s647_s4 = scalar_lea.hbm %s770_s5, 32 }
 0x1ed   :  { %p648_p13 = scmp.ne.s32.totalorder %s770_s5, %s647_s4  ;;  %p651_p0 = scmp.lt.u32.totalorder %s647_s4, %s770_s5 }
 0x1ef   :  { %p653_p1 = pnand %p651_p0, %p648_p13 }
 0x1f1   :  { %656 = shalt.err (!%p653_p1)
}
 0x1f2   :  { %478 = dma.vmem_to_hbm [thread:$0]  %s476_s27, 32, %s770_s5, [#allocation4]  }
 0x1f3   :  { %659 = dma.done.wait [#allocation4], 32  }
 0x1f4   :  { %660 = vsyncadd [#allocation4], 4294967264 }
 0x1f5   :  { %482 = vsyncpa [#allocation3], 1 }
 0x1f6   :  { %483 = vsyncpa [#allocation4], 1 }

</bundles_post_ra>
